<compile_context>
chip_gen: v5e
topology: v5e:2x2
jax: 0.10.0
libtpu: 0.0.40
codegen_flags: <defaults>
</compile_context>

<pallas_src>
import functools

import numpy as np

import jax
import jax.numpy as jnp
from jax.experimental import pallas as pl
from jax.experimental.pallas import tpu as pltpu

_EPS2 = 1e-24   # (1e-12)^2 for rsqrt-based L2 normalization
_NEG = -1e30    # "minus infinity" stand-in for masked-out negatives


def _round_up(n, m):
    return ((n + m - 1) // m) * m


def _triu_tables(nt):
    ii, jj = np.triu_indices(nt)
    return jnp.asarray(ii, jnp.int32), jnp.asarray(jj, jnp.int32)


# --------------------------------------------------------------------------
# Pallas kernel A: X-vs-X cosine similarities, upper block-triangle only.
# 1-D triangular grid; (i, j) block indices come from scalar-prefetch tables.
# x is already L2-normalized bf16 and stays resident; both row tiles are
# sliced from it in-kernel (no duplicated HBM read).
# --------------------------------------------------------------------------
def _xx_kernel(it_ref, jt_ref, xa_ref, xx_ref, *, tm):
    t = pl.program_id(0)
    i = it_ref[t]
    j = jt_ref[t]
    ri = pl.multiple_of(i * tm, tm)
    rj = pl.multiple_of(j * tm, tm)
    xi = xa_ref[pl.ds(ri, tm), :]          # (tm, Dp) bf16
    xj = xa_ref[pl.ds(rj, tm), :]          # (tm, Dp) bf16
    xx_ref[...] = jax.lax.dot_general(
        xi, xj, dimension_numbers=(((1,), (1,)), ((), ())),
        preferred_element_type=jnp.float32)            # (tm, tm) f32


def _compute_xx(xp, *, tm):
    MNp, Dp = xp.shape
    nt = MNp // tm
    it, jt = _triu_tables(nt)
    T = int(it.shape[0])

    # resident bf16 x (x2 for safety) + double-buffered (tm,tm) f32 out + slack
    vmem_bytes = 2 * MNp * Dp * 2 + 2 * tm * tm * 4 + (4 << 20)
    vmem_bytes = int(min(max(vmem_bytes, 32 << 20), 64 << 20))

    # TODO(synk): for very large MN, tile the resident x over a column grid
    # axis instead of keeping the full (MNp, Dp) slab in VMEM (v7x 64 MiB).
    return pl.pallas_call(
        functools.partial(_xx_kernel, tm=tm),
        grid_spec=pltpu.PrefetchScalarGridSpec(
            num_scalar_prefetch=2,
            grid=(T,),
            in_specs=[pl.BlockSpec((MNp, Dp), lambda t, it_r, jt_r: (0, 0))],
            out_specs=pl.BlockSpec((tm, tm),
                                   lambda t, it_r, jt_r: (it_r[t], jt_r[t])),
        ),
        out_shape=jax.ShapeDtypeStruct((MNp, MNp), jnp.float32),
        compiler_params=pltpu.CompilerParams(
            dimension_semantics=("arbitrary",),
            vmem_limit_bytes=vmem_bytes),
    )(it, jt, xp)


# --------------------------------------------------------------------------
# Pallas kernel B: X-vs-W cosine similarities (simple parallel row grid).
# --------------------------------------------------------------------------
def _xw_kernel(xr_ref, w_ref, xw_ref):
    xw_ref[...] = jnp.dot(xr_ref[...], w_ref[...],
                          preferred_element_type=jnp.float32)   # (tm, Cp)


def _compute_xw(xp, wp, *, tm):
    MNp, Dp = xp.shape
    Cp = wp.shape[1]
    vmem_bytes = 2 * (tm * Dp * 2 + Dp * Cp * 2 + tm * Cp * 4) + (4 << 20)
    vmem_bytes = int(min(max(vmem_bytes, 32 << 20), 64 << 20))
    return pl.pallas_call(
        _xw_kernel,
        grid=(MNp // tm,),
        in_specs=[pl.BlockSpec((tm, Dp), lambda i: (i, 0)),
                  pl.BlockSpec((Dp, Cp), lambda i: (0, 0))],
        out_specs=pl.BlockSpec((tm, Cp), lambda i: (i, 0)),
        out_shape=jax.ShapeDtypeStruct((MNp, Cp), jnp.float32),
        compiler_params=pltpu.CompilerParams(
            dimension_semantics=("parallel",),
            vmem_limit_bytes=vmem_bytes),
    )(xp, wp)


# --------------------------------------------------------------------------
# Pallas kernel C: W-vs-W cosine similarities, upper block-triangle only,
# pre-normalized / pre-transposed bf16 W (Cp, Dp), 1-D triangular grid.
# --------------------------------------------------------------------------
def _ww_kernel(it_ref, jt_ref, wi_ref, wj_ref, ww_ref):
    ww_ref[...] = jax.lax.dot_general(
        wi_ref[...], wj_ref[...], dimension_numbers=(((1,), (1,)), ((), ())),
        preferred_element_type=jnp.float32)            # (tc, tc)


def _compute_ww(wtp, *, tc):
    Cp, Dp = wtp.shape
    nt = Cp // tc
    it, jt = _triu_tables(nt)
    T = int(it.shape[0])
    return pl.pallas_call(
        _ww_kernel,
        grid_spec=pltpu.PrefetchScalarGridSpec(
            num_scalar_prefetch=2,
            grid=(T,),
            in_specs=[pl.BlockSpec((tc, Dp), lambda t, it_r, jt_r: (it_r[t], 0)),
                      pl.BlockSpec((tc, Dp), lambda t, it_r, jt_r: (jt_r[t], 0))],
            out_specs=pl.BlockSpec((tc, tc),
                                   lambda t, it_r, jt_r: (it_r[t], jt_r[t])),
        ),
        out_shape=jax.ShapeDtypeStruct((Cp, Cp), jnp.float32),
        compiler_params=pltpu.CompilerParams(
            dimension_semantics=("arbitrary",)),
    )(it, jt, wtp, wtp)


# --------------------------------------------------------------------------
# Pallas kernel D: scaled cross-entropy (label = 0) + top-1 accuracy + n_n.
# Hard-negative mask computed in-kernel from an SMEM threshold scalar;
# padding masks come from broadcasted_iota; mean reductions folded in.
# --------------------------------------------------------------------------
def _loss_kernel(thr_ref, zp_ref, zn_ref, loss_ref, corr_ref, nn_ref, *,
                 scale, n_p, k_neg):
    thr = thr_ref[0]                                             # SMEM scalar

    zn_raw = zn_ref[...]                                         # (1, Kp)
    k_iota = jax.lax.broadcasted_iota(jnp.int32, zn_raw.shape, 1)
    nmask = jnp.logical_and(k_iota < k_neg, zn_raw > thr)
    zn = jnp.where(nmask, zn_raw * scale, _NEG)

    zp_raw = zp_ref[...]                                         # (1, Pp)
    p_iota = jax.lax.broadcasted_iota(jnp.int32, zp_raw.shape, 1)
    pmask = (p_iota < n_p).astype(jnp.float32)
    zp = zp_raw * scale

    max_n = jnp.max(zn)                                          # scalar
    s_neg = jnp.sum(jnp.exp(zn - max_n))                         # scalar

    row_max = jnp.maximum(zp, max_n)                             # (1, Pp)
    denom = jnp.exp(zp - row_max) + jnp.exp(max_n - row_max) * s_neg
    lse = row_max + jnp.log(denom)

    inv_np = 1.0 / float(n_p)
    loss_ref[...] = jnp.sum((lse - zp) * pmask, axis=(0, 1),
                            keepdims=True) * inv_np
    corr_ref[...] = jnp.sum(jnp.where(zp >= max_n, pmask, 0.0), axis=(0, 1),
                            keepdims=True) * inv_np
    nn_ref[...] = jnp.sum(nmask.astype(jnp.float32), axis=(0, 1), keepdims=True)


def _compute_loss(s_p, s_n_top, thresh, scale):
    n_p = int(s_p.shape[0])
    K = int(s_n_top.shape[0])
    Pp = _round_up(max(n_p, 1), 128)
    Kp = _round_up(K, 128)
    f32 = jnp.float32

    zp = jnp.zeros((1, Pp), f32).at[0, :n_p].set(s_p.astype(f32))
    zn = jnp.zeros((1, Kp), f32).at[0, :K].set(s_n_top.astype(f32))

    loss_m, corr_m, nn_m = pl.pallas_call(
        functools.partial(_loss_kernel, scale=float(scale), n_p=n_p, k_neg=K),
        grid=(1,),
        in_specs=[
            pl.BlockSpec(memory_space=pltpu.MemorySpace.SMEM),   # threshold
            pl.BlockSpec((1, Pp), lambda i: (0, 0)),
            pl.BlockSpec((1, Kp), lambda i: (0, 0)),
        ],
        out_specs=(
            pl.BlockSpec((1, 1), lambda i: (0, 0)),
            pl.BlockSpec((1, 1), lambda i: (0, 0)),
            pl.BlockSpec((1, 1), lambda i: (0, 0)),
        ),
        out_shape=(
            jax.ShapeDtypeStruct((1, 1), f32),
            jax.ShapeDtypeStruct((1, 1), f32),
            jax.ShapeDtypeStruct((1, 1), f32),
        ),
    )(thresh, zp, zn)
    return loss_m[0, 0], corr_m[0, 0], nn_m[0, 0]


# --------------------------------------------------------------------------
# Glue: reproduce the torch off-diagonal flatten tricks exactly
# --------------------------------------------------------------------------
def _offdiag_block(A):
    n = A.shape[0]
    return A.reshape(-1)[1:].reshape(n - 1, n + 1)[:, :-1]


def _half_offdiag(A):
    n = A.shape[0]
    return _offdiag_block(A).T.reshape(-1)[: n * (n - 1) // 2]


def _full_offdiag(A):
    return _offdiag_block(A).reshape(-1)


# --------------------------------------------------------------------------
# Full forward pass of LossFunction
# --------------------------------------------------------------------------
def gsc_forward(x, label, W, *, scale=30.0, hard_n=256, hard_d=0.0, hard_p=0):
    if x.ndim == 2:
        x = x[:, None, :]
    N, M, D = x.shape
    C = W.shape[1]

    MN = M * N
    Dp = _round_up(D, 128)
    Cp = _round_up(C, 128)
    MNp = _round_up(MN, 128)

    # ---- one-time L2 normalization + bf16 cast + zero-padding (plain XLA) ----
    # Row i*N + n  <->  x[n, i, :].
    x_m = jnp.transpose(x, (1, 0, 2)).astype(jnp.float32).reshape(MN, D)
    inv_x = jax.lax.rsqrt(jnp.maximum(jnp.sum(x_m * x_m, -1, keepdims=True), _EPS2))
    xn = (x_m * inv_x).astype(jnp.bfloat16)

    w32 = W.astype(jnp.float32)
    inv_w = jax.lax.rsqrt(jnp.maximum(jnp.sum(w32 * w32, 0, keepdims=True), _EPS2))
    wn = (w32 * inv_w).astype(jnp.bfloat16)                      # (D, C)

    xp = jnp.zeros((MNp, Dp), jnp.bfloat16).at[:MN, :D].set(xn)
    wp = jnp.zeros((Dp, Cp), jnp.bfloat16).at[:D, :C].set(wn)
    wtp = jnp.zeros((Cp, Dp), jnp.bfloat16).at[:C, :D].set(wn.T)

    tm = 256 if MNp % 256 == 0 else 128
    tc = 256 if Cp % 256 == 0 else 128

    # Kernels. XX / WW contain garbage in their (never-read) lower block
    # triangles; the glue below only slices the upper-triangle regions.
    xx_full = _compute_xx(xp, tm=tm)
    xw_full = _compute_xw(xp, wp, tm=tm)
    ww_full = _compute_ww(wtp, tc=tc)

    xx = xx_full[:MN, :MN]        # (MN, MN)  pairwise x-x cosines (upper blocks)
    xw = xw_full[:MN, :C]         # (MN, C)   x-W cosines
    ww = ww_full[:C, :C]          # (C, C)    W-W cosines (upper blocks)

    # arange2[n, j] = (j + label[n]) % C  -> column 0 is the target class
    arange2 = (jnp.arange(C, dtype=jnp.int32)[None, :] +
               label[:, None].astype(jnp.int32)) % C

    s_p_parts, s_n_parts = [], []
    for i in range(M):
        costh_x = xx[i * N:(i + 1) * N, i * N:(i + 1) * N]        # (N, N)
        s_n_parts.append(_half_offdiag(costh_x))
        costh2 = jnp.take_along_axis(xw[i * N:(i + 1) * N], arange2, axis=1)
        s_p_parts.append(costh2[:, 0])
        s_n_parts.append(costh2[:, 1:].reshape(-1))
        for j in range(i + 1, M):
            costh_xx = xx[i * N:(i + 1) * N, j * N:(j + 1) * N]   # (N, N)
            s_p_parts.append(jnp.diagonal(costh_xx))
            s_n_parts.append(_full_offdiag(costh_xx))
    s_n_parts.append(_half_offdiag(ww))

    s_n = jnp.concatenate(s_n_parts)
    s_p = jnp.concatenate(s_p_parts)

    K = int(hard_n)
    assert K <= s_n.shape[0], "hard_n must not exceed the number of negatives"
    # NOTE: bf16 matmul operands give ~1e-3 cosine error; top-k hard-negative
    # selection can differ from an f32 torch reference at the boundary.
    s_n_top, _ = jax.lax.top_k(s_n, K)

    min_s_p = jnp.min(s_p)
    # TODO(synk): torch uses masked_select (dynamic length); we keep a static-K
    # buffer and mask in-kernel, which gives identical loss/accuracy/n_n as
    # long as n_n <= hard_n.
    thresh = jnp.reshape(min_s_p - hard_d, (1,)).astype(jnp.float32)

    if hard_p != 0:
        s_p = -jax.lax.top_k(-s_p, int(hard_p))[0]                # k smallest

    loss, corr_frac, n_n_f = _compute_loss(s_p, s_n_top, thresh, scale)
    prec2 = 100.0 * corr_frac                                     # top-1 accuracy %
    n_n = n_n_f.astype(jnp.int32)
    return loss, prec2, prec2, n_n


# --------------------------------------------------------------------------
if __name__ == "__main__":
    N, M, D, C = 8, 2, 32, 16          # batch, utterances/sample, num_out, num_class
    scale, hard_n, hard_d, hard_p = 30.0, 256, 0.0, 0

    key = jax.random.PRNGKey(0)
    kx, kw, kl = jax.random.split(key, 3)

    # xavier_normal_(W, gain=1): std = sqrt(2 / (fan_in + fan_out))
    w_std = (2.0 / (D + C)) ** 0.5
    W = w_std * jax.random.normal(kw, (D, C), dtype=jnp.float32)

    x = jax.random.normal(kx, (N, M, D), dtype=jnp.float32)
    label = jax.random.randint(kl, (N,), 0, C, dtype=jnp.int32)

    loss, prec, _, n_n = gsc_forward(x, label, W, scale=scale, hard_n=hard_n,
                                     hard_d=hard_d, hard_p=hard_p)
    jax.block_until_ready((loss, prec, n_n))
    print("KERNEL_OK")
</pallas_src>

<mosaic_0001>
module attributes {stable_mosaic.version = 11 : i64} {
  func.func @_xx_kernel(%arg0: i32, %arg1: memref<1xi32, #tpu.memory_space<smem>>, %arg2: memref<1xi32, #tpu.memory_space<smem>>, %arg3: memref<128x128xbf16, #tpu.memory_space<vmem>>, %arg4: memref<128x128xf32, #tpu.memory_space<vmem>>) attributes {dimension_semantics = [#tpu.dimension_semantics<arbitrary>], iteration_bounds = array<i64: 1>, scalar_prefetch = 2 : i64, scratch_operands = 0 : i64, tpu.core_type = #tpu.core_type<tc>, window_params = [{pipeline_mode = #tpu.pipeline_mode<synchronous>, transform_indices = @transform_0, window_bounds = array<i64: 128, 128>}, {transform_indices = @transform_1, window_bounds = array<i64: 128, 128>}]} {
    %0 = arith.index_cast %arg0 : i32 to index
    %1 = memref.load %arg1[%0] : memref<1xi32, #tpu.memory_space<smem>>
    %2 = arith.index_cast %arg0 : i32 to index
    %3 = memref.load %arg2[%2] : memref<1xi32, #tpu.memory_space<smem>>
    %c128_i32 = arith.constant 128 : i32
    %4 = arith.muli %1, %c128_i32 : i32
    %5 = tpu.assume_multiple %4, 128 : i32
    %c128_i32_0 = arith.constant 128 : i32
    %6 = arith.muli %3, %c128_i32_0 : i32
    %7 = tpu.assume_multiple %6, 128 : i32
    %8 = arith.index_cast %5 : i32 to index
    %c0 = arith.constant 0 : index
    %9 = vector.load %arg3[%8, %c0] : memref<128x128xbf16, #tpu.memory_space<vmem>>, vector<128x128xbf16>
    %10 = arith.index_cast %7 : i32 to index
    %c0_1 = arith.constant 0 : index
    %11 = vector.load %arg3[%10, %c0_1] : memref<128x128xbf16, #tpu.memory_space<vmem>>, vector<128x128xbf16>
    %cst = arith.constant dense<0.000000e+00> : vector<128x128xf32>
    %12 = tpu.matmul %9, %11, %cst {dimension_numbers = #tpu.dot_dimension_numbers<[1], [1], [0], [0], [0, 0, 1, 0], [], []>} : vector<128x128xbf16>, vector<128x128xbf16>, vector<128x128xf32> -> vector<128x128xf32>
    %c0_2 = arith.constant 0 : index
    %c0_3 = arith.constant 0 : index
    %13 = vector.load %arg4[%c0_2, %c0_3] : memref<128x128xf32, #tpu.memory_space<vmem>>, vector<128x128xf32>
    tpu.vector_store %arg4[%c0_2, %c0_3], %12 {strides = array<i32>} : memref<128x128xf32, #tpu.memory_space<vmem>>, vector<128x128xf32>,
    return
  }
  func.func @transform_0(%arg0: i32, %arg1: memref<1xi32, #tpu.memory_space<smem>>, %arg2: memref<1xi32, #tpu.memory_space<smem>>) -> (i32, i32) {
    %c0_i32 = arith.constant 0 : i32
    %c0_i32_0 = arith.constant 0 : i32
    %c0_i32_1 = arith.constant 0 : i32
    return %c0_i32, %c0_i32_0 : i32, i32
  }
  func.func @transform_1(%arg0: i32, %arg1: memref<1xi32, #tpu.memory_space<smem>>, %arg2: memref<1xi32, #tpu.memory_space<smem>>) -> (i32, i32) {
    %0 = arith.index_cast %arg0 : i32 to index
    %1 = memref.load %arg1[%0] : memref<1xi32, #tpu.memory_space<smem>>
    %2 = arith.index_cast %arg0 : i32 to index
    %3 = memref.load %arg2[%2] : memref<1xi32, #tpu.memory_space<smem>>
    %c0_i32 = arith.constant 0 : i32
    return %1, %3 : i32, i32
  }
}

</mosaic_0001>

<bundles_post_ra>
// kernel: tpu_custom_call.1
= control target key start
LH: loop header
LB: loop body
LE: loop exit
PB: predicated region body
PF: predicated region fallthrough
CT: control target
= control target key end

     0   :  { %10 = vsyncpa [#allocation6], 0  ;;  %s498_s0 = inlined_call_operand.<no memory space> [shape: s32[1], index: 0, kind: input, shape index: {}]   ;;  %s499_s1 = inlined_call_operand.<no memory space> [shape: s32[1], index: 1, kind: input, shape index: {}]   ;;  %s500_s2 = inlined_call_operand.hbm [shape: bf16[128,128], index: 2, kind: input, shape index: {}]   ;;  %s501_s3 = inlined_call_operand.hbm [shape: f32[128,128], index: 3, kind: output, shape index: {}]  }
   0x1   :  { %11 = vsyncpa [#allocation7], 0  ;;  %s16_s14 = sshll.u32 %s500_s2, 4  ;;  %s438_s15 = smov [#allocation5]   ;;  %s17_s14 = int_to_ptr.hbm [resolvable:$true] %s16_s14 }
   0x2   :  { %s18_s16 = sshll.u32 %s438_s15, 4  ;;  %s439_s17 = smov 64   ;;  %s19_s16 = int_to_ptr.vmem [resolvable:$true] %s18_s16 }
   0x3   :  { %s440_s18 = smov 4  }
   0x4   :  { %24 = dma.hbm_to_vmem [thread:$0]  %s17_s14, 1024, %s19_s16, [#allocation6], %s439_s17, %s439_s17, %s440_s18  }
   0x5   :  { %434 = dma.done.wait [#allocation6], 1024  }
   0x6   :  { %435 = vsyncadd [#allocation6], 4294966272  ;;  %s271_s21 = sshll.u32 %s499_s1, 7  ;;  %s270_s26 = sshll.u32 %s498_s0, 7 }
   0x7   :  { %s56_s22 = sshra.s32 %s271_s21, 3  ;;  %s36_s27 = sshra.s32 %s270_s26, 3 }
   0x8   :  { %s273_s23 = sshll.u32 %s56_s22, 2  ;;  %s272_s28 = sshll.u32 %s36_s27, 2 }
   0x9   :  { %s470_s24 = scalar_lea.vmem [#allocation5], %s273_s23  ;;  %s39_s29 = scalar_lea.vmem [#allocation5], %s272_s28 }
   0xa   :  { %v355_v0 = vld [vmem:[%s470_s24 + $0x38] sm:$0xff]  ;;  %v354_v1 = vld [vmem:[%s470_s24 + $0x30] sm:$0xff]  ;;  %v353_v2 = vld [vmem:[%s470_s24 + $0x28] sm:$0xff]  ;;  %s338_s5 = sshll.u32 %s498_s0, 4  ;;  %s441_s12 = smov [#allocation8]  }
   0xb   :  { %172 = vmatpush.bf16.xpose.msra.mxu0 %v355_v0  ;;  %356 = vmatpush.bf16.xpose.msra.mxu1 %v355_v0  ;;  %v352_v3 = vld [vmem:[%s470_s24 + $0x20] sm:$0xff]  ;;  %v351_v4 = vld [vmem:[%s470_s24 + $0x18] sm:$0xff]  ;;  %v350_v5 = vld [vmem:[%s470_s24 + $0x10] sm:$0xff]  ;;  %s244_s8 = sadd.s32 %s338_s5, %s499_s1  ;;  %s247_s13 = sshll.u32 %s441_s12, 4  ;;  %s248_s13 = int_to_ptr.vmem [resolvable:$true] %s247_s13 }
   0xc   :  { %357 = vmatpush.bf16.xpose.msra.mxu2 %v355_v0  ;;  %358 = vmatpush.bf16.xpose.msra.mxu3 %v355_v0  ;;  %v349_v6 = vld [vmem:[%s470_s24 + $0x8] sm:$0xff]  ;;  %v348_v7 = vld [vmem:[%s470_s24] sm:$0xff]  ;;  %v342_v9 = vld [vmem:[%s39_s29 + $0x10] sm:$0xff]  ;;  %s339_s9 = sshll.u32 %s244_s8, 3  ;;  %s426_s18 = scalar_lea.hbm %s501_s3, 128 }
   0xd   :  { %v340_v8 = vld [vmem:[%s39_s29] sm:$0xff]  ;;  %v346_v11 = vld [vmem:[%s39_s29 + $0x30] sm:$0xff]  ;;  %v341_v12 = vld [vmem:[%s39_s29 + $0x8] sm:$0xff]  ;;  %s246_s0 = scalar_lea.hbm %s501_s3, %s339_s9 }
   0xe   :  { %v344_v10 = vld [vmem:[%s39_s29 + $0x20] sm:$0xff]  ;;  %v343_v13 = vld [vmem:[%s39_s29 + $0x18] sm:$0xff]  ;;  %v345_v14 = vld [vmem:[%s39_s29 + $0x28] sm:$0xff]  ;;  %s249_s14 = sshll.u32 %s246_s0, 4  ;;  %s250_s14 = int_to_ptr.hbm [resolvable:$true] %s249_s14 }
   0xf   :  { %v347_v15 = vld [vmem:[%s39_s29 + $0x38] sm:$0xff]  ;;  %s422_s1 = sshra.s32 %s250_s14, 4  ;;  %s423_s1 = int_to_ptr.hbm [resolvable:$true] %s422_s1 }
  0x10   :  { %s424_s15 = scalar_lea.hbm %s423_s1, 128  ;;  %p427_p1 = scmp.lt.s32.totalorder %s423_s1, %s501_s3 }
  0x11   :  { %p425_p0 = scmp.ne.s32.totalorder %s423_s1, %s424_s15  ;;  %p428_p2 = scmp.lt.s32.totalorder %s426_s18, %s424_s15 }
  0x13   :  { %173 = vmatpush.bf16.xpose.msra.mxu0 %v354_v1  ;;  %359 = vmatpush.bf16.xpose.msra.mxu1 %v354_v1  ;;  %p429_p3 = por %p428_p2, %p427_p1 }
  0x14   :  { %360 = vmatpush.bf16.xpose.msra.mxu2 %v354_v1  ;;  %361 = vmatpush.bf16.xpose.msra.mxu3 %v354_v1 }
  0x15   :  { %p430_p4 = pnand %p429_p3, %p425_p0 }
  0x1b   :  { %174 = vmatpush.bf16.xpose.msra.mxu0 %v353_v2  ;;  %362 = vmatpush.bf16.xpose.msra.mxu1 %v353_v2 }
  0x1c   :  { %363 = vmatpush.bf16.xpose.msra.mxu2 %v353_v2  ;;  %364 = vmatpush.bf16.xpose.msra.mxu3 %v353_v2 }
  0x23   :  { %175 = vmatpush.bf16.xpose.msra.mxu0 %v352_v3  ;;  %365 = vmatpush.bf16.xpose.msra.mxu1 %v352_v3 }
  0x24   :  { %366 = vmatpush.bf16.xpose.msra.mxu2 %v352_v3  ;;  %367 = vmatpush.bf16.xpose.msra.mxu3 %v352_v3 }
  0x2b   :  { %176 = vmatpush.bf16.xpose.msra.mxu0 %v351_v4  ;;  %368 = vmatpush.bf16.xpose.msra.mxu1 %v351_v4 }
  0x2c   :  { %369 = vmatpush.bf16.xpose.msra.mxu2 %v351_v4  ;;  %370 = vmatpush.bf16.xpose.msra.mxu3 %v351_v4 }
  0x33   :  { %177 = vmatpush.bf16.xpose.msra.mxu0 %v350_v5  ;;  %371 = vmatpush.bf16.xpose.msra.mxu1 %v350_v5 }
  0x34   :  { %372 = vmatpush.bf16.xpose.msra.mxu2 %v350_v5  ;;  %373 = vmatpush.bf16.xpose.msra.mxu3 %v350_v5 }
  0x3b   :  { %178 = vmatpush.bf16.xpose.msra.mxu0 %v349_v6  ;;  %374 = vmatpush.bf16.xpose.msra.mxu1 %v349_v6 }
  0x3c   :  { %375 = vmatpush.bf16.xpose.msra.mxu2 %v349_v6  ;;  %376 = vmatpush.bf16.xpose.msra.mxu3 %v349_v6 }
  0x43   :  { %179 = vmatpush.bf16.xpose.msra.mxu0 %v348_v7  ;;  %377 = vmatpush.bf16.xpose.msra.mxu1 %v348_v7 }
  0x44   :  { %378 = vmatpush.bf16.xpose.msra.mxu2 %v348_v7  ;;  %379 = vmatpush.bf16.xpose.msra.mxu3 %v348_v7 }
  0x4a   :  { %180 = vmatmul.bf16.vlgmr.msra.gmra.mxu0 %v340_v8  ;;  %190 = vmatmul.bf16.vlgmr.msra.gmra.mxu1 %v342_v9 }
  0x4b   :  { %200 = vmatmul.bf16.vlgmr.msra.gmra.mxu2 %v344_v10  ;;  %210 = vmatmul.bf16.vlgmr.msra.gmra.mxu3 %v346_v11 }
  0x5a   :  { %185 = vmatmul.bf16.gmra.mxu0 %v341_v12  ;;  %195 = vmatmul.bf16.gmra.mxu1 %v343_v13 }
  0x5b   :  { %205 = vmatmul.bf16.gmra.mxu2 %v345_v14  ;;  %215 = vmatmul.bf16.gmra.mxu3 %v347_v15 }
  0xc7   :  { %v181_v16 = vpop.f32.mrf.mxu0  ;;  %v191_v17 = vpop.f32.mrf.mxu1 }
  0xc8   :  { %221 = vst [vmem:[#allocation8] sm:$0xff] %v181_v16 }
  0xc9   :  { %225 = vst [vmem:[#allocation8 + $0x20] sm:$0xff] %v191_v17 }
  0xce   :  { %v201_v18 = vpop.f32.mrf.mxu2  ;;  %v211_v19 = vpop.f32.mrf.mxu3 }
  0xcf   :  { %229 = vst [vmem:[#allocation8 + $0x40] sm:$0xff] %v201_v18  ;;  %v183_v20 = vpop.f32.mrf.mxu0  ;;  %v193_v21 = vpop.f32.mrf.mxu1 }
  0xd0   :  { %233 = vst [vmem:[#allocation8 + $0x60] sm:$0xff] %v211_v19 }
  0xd1   :  { %222 = vst [vmem:[#allocation8 + $0x8] sm:$0xff] %v183_v20 }
  0xd2   :  { %226 = vst [vmem:[#allocation8 + $0x28] sm:$0xff] %v193_v21 }
  0xd6   :  { %v203_v22 = vpop.f32.mrf.mxu2  ;;  %v213_v23 = vpop.f32.mrf.mxu3 }
  0xd7   :  { %230 = vst [vmem:[#allocation8 + $0x48] sm:$0xff] %v203_v22  ;;  %v186_v24 = vpop.f32.mrf.mxu0  ;;  %v196_v25 = vpop.f32.mrf.mxu1 }
  0xd8   :  { %234 = vst [vmem:[#allocation8 + $0x68] sm:$0xff] %v213_v23 }
  0xd9   :  { %223 = vst [vmem:[#allocation8 + $0x10] sm:$0xff] %v186_v24 }
  0xda   :  { %227 = vst [vmem:[#allocation8 + $0x30] sm:$0xff] %v196_v25 }
  0xde   :  { %v206_v26 = vpop.f32.mrf.mxu2  ;;  %v216_v27 = vpop.f32.mrf.mxu3 }
  0xdf   :  { %231 = vst [vmem:[#allocation8 + $0x50] sm:$0xff] %v206_v26  ;;  %v188_v28 = vpop.f32.mrf.mxu0  ;;  %v198_v29 = vpop.f32.mrf.mxu1 }
  0xe0   :  { %235 = vst [vmem:[#allocation8 + $0x70] sm:$0xff] %v216_v27 }
  0xe1   :  { %224 = vst [vmem:[#allocation8 + $0x18] sm:$0xff] %v188_v28 }
  0xe2   :  { %228 = vst [vmem:[#allocation8 + $0x38] sm:$0xff] %v198_v29 }
  0xe6   :  { %v208_v30 = vpop.f32.mrf.mxu2  ;;  %v218_v31 = vpop.f32.mrf.mxu3 }
  0xe7   :  { %232 = vst [vmem:[#allocation8 + $0x58] sm:$0xff] %v208_v30 }
  0xe8   :  { %236 = vst [vmem:[#allocation8 + $0x78] sm:$0xff] %v218_v31 }
  0xe9   :  { %433 = shalt.err (!%p430_p4)
}
  0xea   :  { %s442_s21 = smov 128   ;;  %s443_s22 = smov 8  }
  0xeb   :  { %255 = dma.vmem_to_hbm [thread:$0]  %s248_s13, 2048, %s250_s14, [#allocation7], %s442_s21, %s442_s21, %s443_s22  }
  0xec   :  { %436 = dma.done.wait [#allocation7], 2048  }
  0xed   :  { %437 = vsyncadd [#allocation7], 4294965248 }
  0xee   :  { %260 = vsyncpa [#allocation6], 1 }
  0xef   :  { %261 = vsyncpa [#allocation7], 1 }

</bundles_post_ra>
